<compile_context>
chip_gen: v5e
topology: v5e:2x2
jax: 0.10.0
libtpu: 0.0.40
codegen_flags: <defaults>
</compile_context>

<pallas_src>
import jax
import jax.numpy as jnp
from jax.experimental import pallas as pl
from jax.experimental.pallas import tpu as pltpu

_LANE = 128
_SUBLANE = 8
# ~2 MiB per block => ~8 MiB scoped VMEM with double-buffered in + out.
_TARGET_BLOCK_BYTES = 2 * 1024 * 1024


# ---------------------------------------------------------------------------
# Pallas kernel: identity transform on one dense (rows, 128) tile in VMEM.
# ---------------------------------------------------------------------------
def _copy_kernel(x_ref, o_ref):
    o_ref[...] = x_ref[...]


def _materialize_copy(flat2d):
    """Single pallas_call streaming copy of a lane-dense (rows, 128) array."""
    rows, lane = flat2d.shape
    itemsize = jnp.dtype(flat2d.dtype).itemsize

    # Rows per block targeting ~2 MiB, kept a multiple of the 8-row sublane
    # tile; clamp to the full extent for small inputs (single grid step).
    tile_rows = max(_SUBLANE, _TARGET_BLOCK_BYTES // (lane * itemsize))
    tile_rows -= tile_rows % _SUBLANE
    if tile_rows >= rows:
        tile_rows = rows  # full-extent block is always a legal block shape
    grid = (pl.cdiv(rows, tile_rows),)

    return pl.pallas_call(
        _copy_kernel,
        out_shape=jax.ShapeDtypeStruct((rows, lane), flat2d.dtype),
        grid=grid,
        in_specs=[pl.BlockSpec((tile_rows, lane), lambda i: (i, 0))],
        out_specs=pl.BlockSpec((tile_rows, lane), lambda i: (i, 0)),
        compiler_params=pltpu.CompilerParams(
            dimension_semantics=(("parallel",) if grid[0] > 1
                                 else ("arbitrary",))),
        cost_estimate=pl.CostEstimate(
            flops=0, transcendentals=0,
            bytes_accessed=2 * rows * lane * itemsize),
    )(flat2d)


# ---------------------------------------------------------------------------
# Wrapper: HiddenNoisysLayer.forward
# ---------------------------------------------------------------------------
def hidden_noisys_layer_forward(images,
                                size=None,
                                dropout_p=0.3,
                                crop_ratio=0.7,
                                cropout_ratio=0.035,
                                jpeg_quality=50,
                                materialize=True):
    """Pallas implementation of HiddenNoisysLayer.forward.

    images: (B, 3, H, W).  The reference tfms list holds only the identity, so
    the forward is the batch itself.  With materialize=False (the optimal
    path) the input is returned untouched; with materialize=True a fresh
    buffer is produced by a single lane-dense Pallas copy kernel.
    """
    if images.ndim != 4 or images.shape[1] != 3:
        raise ValueError("The shape of the images should be B x 3 x H x W.")
    del size, dropout_p, crop_ratio, cropout_ratio, jpeg_quality  # unused (spec)

    if not materialize:
        # A Pallas kernel cannot beat "no work": the forward is a provable
        # identity, so just return the input.
        return images

    B, C, H, W = images.shape
    n = B * C * H * W
    flat = images.reshape(-1)

    # Lane padding only if the element count is not a multiple of 128
    # (perf-only; typical image shapes — and the demo — need none).
    pad = (-n) % _LANE
    if pad:
        flat = jnp.pad(flat, (0, pad))

    out = _materialize_copy(flat.reshape(-1, _LANE)).reshape(-1)
    if pad:
        out = out[:n]
    return out.reshape(B, C, H, W)


# Pure-JAX reference of the module's forward (identity on the batch).
def ref_forward(images):
    if images.ndim != 4 or images.shape[1] != 3:
        raise ValueError("The shape of the images should be B x 3 x H x W.")
    # torch.stack([identity(img) for img in images]) == images
    return jnp.stack([img for img in images])


# ---------------------------------------------------------------------------
if __name__ == "__main__":
    B, C, H, W = 2, 3, 16, 16

    key = jax.random.PRNGKey(0)
    images = jax.random.normal(key, (B, C, H, W), jnp.float32)  # NCHW, like PyTorch

    ref = ref_forward(images)

    # Zero-work fast path (the review's top optimization).
    fast = hidden_noisys_layer_forward(images, materialize=False)
    assert bool(jnp.array_equal(fast, ref))

    # Materialized Pallas-kernel path.
    out = hidden_noisys_layer_forward(images, materialize=True)
    out = jax.block_until_ready(out)

    assert out.shape == (B, C, H, W), out.shape
    assert out.dtype == images.dtype, out.dtype
    assert bool(jnp.all(jnp.isfinite(out)))
    # Identity copy must be exact — no loose tolerance that could hide a bug.
    assert bool(jnp.array_equal(out, ref)), float(jnp.max(jnp.abs(out - ref)))

    print("KERNEL_OK")
</pallas_src>

<mosaic_0001>
module attributes {stable_mosaic.version = 11 : i64} {
  func.func @_copy_kernel(%arg0: i32, %arg1: memref<12x128xf32, #tpu.memory_space<vmem>>, %arg2: memref<12x128xf32, #tpu.memory_space<vmem>>) attributes {dimension_semantics = [#tpu.dimension_semantics<arbitrary>], iteration_bounds = array<i64: 1>, scalar_prefetch = 0 : i64, scratch_operands = 0 : i64, tpu.core_type = #tpu.core_type<tc>, window_params = [{transform_indices = @transform_0, window_bounds = array<i64: 12, 128>}, {transform_indices = @transform_1, window_bounds = array<i64: 12, 128>}]} {
    %c0 = arith.constant 0 : index
    %c0_0 = arith.constant 0 : index
    %0 = vector.load %arg1[%c0, %c0_0] : memref<12x128xf32, #tpu.memory_space<vmem>>, vector<12x128xf32>
    %c0_1 = arith.constant 0 : index
    %c0_2 = arith.constant 0 : index
    %1 = vector.load %arg2[%c0_1, %c0_2] : memref<12x128xf32, #tpu.memory_space<vmem>>, vector<12x128xf32>
    tpu.vector_store %arg2[%c0_1, %c0_2], %0 {strides = array<i32>} : memref<12x128xf32, #tpu.memory_space<vmem>>, vector<12x128xf32>,
    return
  }
  func.func @transform_0(%arg0: i32) -> (i32, i32) {
    %c0_i32 = arith.constant 0 : i32
    %c0_i32_0 = arith.constant 0 : i32
    return %arg0, %c0_i32 : i32, i32
  }
  func.func @transform_1(%arg0: i32) -> (i32, i32) {
    %c0_i32 = arith.constant 0 : i32
    %c0_i32_0 = arith.constant 0 : i32
    return %arg0, %c0_i32 : i32, i32
  }
}

</mosaic_0001>

<bundles_post_ra>
// kernel: tpu_custom_call.1
= control target key start
LH: loop header
LB: loop body
LE: loop exit
PB: predicated region body
PF: predicated region fallthrough
CT: control target
= control target key end

     0   :  { %6 = vsyncpa [#allocation3], 0  ;;  %s124_s0 = inlined_call_operand.hbm [shape: f32[12,128], index: 0, kind: input, shape index: {}]   ;;  %s125_s1 = inlined_call_operand.hbm [shape: f32[12,128], index: 1, kind: output, shape index: {}]  }
   0x1   :  { %7 = vsyncpa [#allocation4], 0  ;;  %s12_s8 = sshll.u32 %s124_s0, 4  ;;  %s104_s9 = smov [#allocation2]   ;;  %s13_s8 = int_to_ptr.hbm [resolvable:$true] %s12_s8 }
   0x2   :  { %s14_s10 = sshll.u32 %s104_s9, 4  ;;  %s105_s11 = smov 128   ;;  %s15_s10 = int_to_ptr.vmem [resolvable:$true] %s14_s10 }
   0x3   :  { %s106_s12 = smov 8  }
   0x4   :  { %20 = dma.hbm_to_vmem [thread:$0]  %s13_s8, 256, %s15_s10, [#allocation3], %s105_s11, %s105_s11, %s106_s12  }
   0x5   :  { %100 = dma.done.wait [#allocation3], 256  }
   0x6   :  { %101 = vsyncadd [#allocation3], 4294967040  ;;  %s107_s13 = smov [#allocation5]   ;;  %s35_s17 = sshll.u32 %s125_s1, 4  ;;  %v25_v0 = vld [vmem:[#allocation2] sm:$0xff]  ;;  %s36_s17 = int_to_ptr.hbm [resolvable:$true] %s35_s17 }
   0x7   :  { %s33_s14 = sshll.u32 %s107_s13, 4  ;;  %v26_v1 = vld [vmem:[#allocation2 + $0x8] sm:$0xf]  ;;  %27 = vst [vmem:[#allocation5] sm:$0xff] %v25_v0  ;;  %s34_s14 = int_to_ptr.vmem [resolvable:$true] %s33_s14 }
   0x8   :  { %28 = vst [vmem:[#allocation5 + $0x8] sm:$0xf] %v26_v1 }
   0x9   :  { %41 = dma.vmem_to_hbm [thread:$0]  %s34_s14, 256, %s36_s17, [#allocation4], %s105_s11, %s105_s11, %s106_s12  }
   0xa   :  { %102 = dma.done.wait [#allocation4], 256  }
   0xb   :  { %103 = vsyncadd [#allocation4], 4294967040 }
   0xc   :  { %46 = vsyncpa [#allocation3], 1 }
   0xd   :  { %47 = vsyncpa [#allocation4], 1 }

</bundles_post_ra>
